<compile_context>
chip_gen: v7x
topology: tpu7x:2x2x1
jax: 0.10.0
libtpu: 0.0.40
codegen_flags: <defaults>
</compile_context>

<pallas_src>
import functools

import jax
import jax.numpy as jnp
import numpy as np
from jax.experimental import pallas as pl
from jax.experimental.pallas import tpu as pltpu


def _round_up(x, m):
    return ((x + m - 1) // m) * m


def _choose_img_tile(batch, tokens_per_img, target_rows):
    """Largest divisor of `batch` that (a) keeps the image-row and token-row
    blocks legal under the (8,128) sublane rule, (b) keeps the token-row tile
    near `target_rows`, and (c) when possible leaves >=2 grid steps so both
    v7x TensorCores get work.  Never falls back to a whole-batch block unless
    it is the only legal choice."""
    valid = [t for t in range(1, batch + 1)
             if batch % t == 0 and (t % 8 == 0 or t == batch)]
    multi = [t for t in valid if batch // t >= 2]
    if multi:
        valid = multi
    within = [t for t in valid if t * tokens_per_img <= target_rows]
    return max(within) if within else min(valid)


def _vmem_limit_bytes(rows_tile, dp, h_pad, img_tile):
    """Right-size the VMEM limit from the tile footprint (all f32)."""
    need = (2 * rows_tile * dp * 4        # streamed tokens (double-buffered)
            + 2 * dp * h_pad * 4          # w_emb (counted x2, conservative)
            + rows_tile * h_pad * 4       # h intermediate
            + img_tile * rows_tile * 4    # pooling matrix
            + 8 * h_pad * 4               # packed small params
            + 2 * img_tile * h_pad * 4)   # output (double-buffered)
    limit = int(need * 1.5) + (4 << 20)   # headroom for Mosaic scratch/pipeline
    return max(16 << 20, min(limit, 40 << 20))


def _classifier_kernel(tokens_ref, w_emb_ref, params_ref, out_ref, *,
                       img_tile, tokens_per_img, hidden, eps):
    # tokens_ref : [img_tile*T, Dp]  f32  (row-strip tokens, streamed from x)
    # w_emb_ref  : [Dp, H_pad]       f32
    # params_ref : [8, H_pad]        f32  rows 0..4 = b_emb, gamma, beta,
    #                                     w_head, b_head(broadcast)
    # out_ref    : [img_tile, H_pad] f32  (lane-dense; per-image logit bcast)
    h = jnp.dot(tokens_ref[...], w_emb_ref[...],
                preferred_element_type=jnp.float32)            # MXU, f32 acc
    h = h + params_ref[0:1, :]
    # TODO(synk): exact (erf) GELU would better match HF classification heads;
    # the tanh approximation is used because it lowers cleanly everywhere.
    h = jax.nn.gelu(h)

    # Global mean pool over each image's tokens via an MXU matmul with a
    # block-averaging matrix (avoids a reshape crossing the (8,128) tiling).
    rows = img_tile * tokens_per_img
    row_id = jax.lax.broadcasted_iota(jnp.int32, (img_tile, rows), 1)
    img_id = jax.lax.broadcasted_iota(jnp.int32, (img_tile, rows), 0)
    in_img = ((row_id >= img_id * tokens_per_img)
              & (row_id < (img_id + 1) * tokens_per_img))
    pool = jnp.where(in_img, 1.0, 0.0)
    pooled = jnp.dot(pool, h, preferred_element_type=jnp.float32)
    pooled = pooled * (1.0 / float(tokens_per_img))            # [img_tile, H_pad]

    # LayerNorm over the original `hidden` lanes only (padded lanes masked;
    # gamma/beta/w_head padding lanes are zero so they contribute nothing).
    h_pad = pooled.shape[-1]
    lane = jax.lax.broadcasted_iota(jnp.int32, (1, h_pad), 1)
    mask = jnp.where(lane < hidden, 1.0, 0.0)
    inv_h = 1.0 / float(hidden)
    mu = jnp.sum(pooled * mask, axis=-1, keepdims=True) * inv_h
    diff = (pooled - mu) * mask
    var = jnp.sum(diff * diff, axis=-1, keepdims=True) * inv_h
    normed = (pooled - mu) * jax.lax.rsqrt(var + eps)
    normed = normed * params_ref[1:2, :] + params_ref[2:3, :]

    # Classifier head (output width 1): VPU multiply + lane reduction (no MXU).
    logit = jnp.sum(normed * params_ref[3:4, :], axis=-1, keepdims=True)
    out_ref[...] = jnp.broadcast_to(logit, out_ref.shape) + params_ref[4:5, :]


def skin_cancer_detector_forward(x_nchw, w_emb, packed_params, *, hidden,
                                 patch=8, target_rows=2048):
    """x_nchw: [B, C, H, W] float32.  Returns logits [B, 1] float32."""
    B, C, H, W = x_nchw.shape
    assert H % patch == 0, "image height must be divisible by the patch size"
    ph = H // patch
    tokens_per_img = C * ph
    dp = patch * W                          # strip-token feature dim
    dp_w, h_pad = w_emb.shape
    assert dp_w == dp, (dp_w, dp)

    # Row-strip tokenisation: contiguous in NCHW layout, so this reshape is a
    # free bitcast (no extra HBM staging pass) — the kernel streams x's f32
    # pixels exactly once.
    tokens = x_nchw.reshape(B * tokens_per_img, dp)

    img_tile = _choose_img_tile(B, tokens_per_img, target_rows)
    rows_tile = img_tile * tokens_per_img
    grid = (B // img_tile,)

    kernel = functools.partial(_classifier_kernel, img_tile=img_tile,
                               tokens_per_img=tokens_per_img, hidden=hidden,
                               eps=1e-5)

    out_padded = pl.pallas_call(
        kernel,
        out_shape=jax.ShapeDtypeStruct((B, h_pad), jnp.float32),
        grid=grid,
        in_specs=[
            pl.BlockSpec((rows_tile, dp), lambda i: (i, 0)),    # streamed tokens
            pl.BlockSpec((dp, h_pad), lambda i: (0, 0)),        # w_emb
            pl.BlockSpec((8, h_pad), lambda i: (0, 0)),         # packed params
        ],
        out_specs=pl.BlockSpec((img_tile, h_pad), lambda i: (i, 0)),
        compiler_params=pltpu.CompilerParams(
            dimension_semantics=("parallel",),
            vmem_limit_bytes=_vmem_limit_bytes(rows_tile, dp, h_pad, img_tile)),
    )(tokens, w_emb, packed_params)

    return out_padded[:, :1]


def init_params(key, *, patch=8, width=16, hidden=32):
    dp = patch * width
    k1, k2 = jax.random.split(key)
    return {
        "w_emb":  jax.random.normal(k1, (dp, hidden), jnp.float32)
                  / jnp.sqrt(jnp.float32(dp)),
        "b_emb":  jnp.zeros((1, hidden), jnp.float32),
        "gamma":  jnp.ones((1, hidden), jnp.float32),
        "beta":   jnp.zeros((1, hidden), jnp.float32),
        "w_head": jax.random.normal(k2, (hidden, 1), jnp.float32)
                  / jnp.sqrt(jnp.float32(hidden)),
        "b_head": jnp.zeros((1, 1), jnp.float32),
    }


def prepare_params(params):
    """Pad hidden to a lane multiple of 128 and pack the small vectors into a
    single (8, H_pad) array (one BlockSpec / DMA instead of five tiny ones)."""
    dp, hidden = params["w_emb"].shape
    h_pad = _round_up(hidden, 128)

    w_emb = jnp.zeros((dp, h_pad), jnp.float32).at[:, :hidden].set(params["w_emb"])

    packed = jnp.zeros((8, h_pad), jnp.float32)
    packed = packed.at[0, :hidden].set(params["b_emb"][0])
    packed = packed.at[1, :hidden].set(params["gamma"][0])
    packed = packed.at[2, :hidden].set(params["beta"][0])
    packed = packed.at[3, :hidden].set(params["w_head"][:, 0])
    packed = packed.at[4, :].set(params["b_head"][0, 0])   # bcast to all lanes
    return w_emb, packed, hidden


def reference_forward(x_nchw, params, *, patch=8):
    """Pure-JAX f32 reference (unpadded) for correctness checking."""
    B, C, H, W = x_nchw.shape
    ph = H // patch
    tokens = x_nchw.reshape(B, C * ph, patch * W)
    h = jax.nn.gelu(jnp.einsum("btd,dh->bth", tokens, params["w_emb"])
                    + params["b_emb"])
    pooled = h.mean(axis=1)
    mu = pooled.mean(-1, keepdims=True)
    var = ((pooled - mu) ** 2).mean(-1, keepdims=True)
    normed = ((pooled - mu) * jax.lax.rsqrt(var + 1e-5)
              * params["gamma"] + params["beta"])
    return normed @ params["w_head"] + params["b_head"]


if __name__ == "__main__":
    key = jax.random.PRNGKey(0)
    kx, kp = jax.random.split(key)

    # Small batch: B=16, C=3, 16x16 images, patch=8 -> 6 strip-tokens/image,
    # Dp = 128.  Tile chooser picks img_tile=8 -> a 2-step parallel grid.
    B, C, HW, PATCH, HIDDEN = 16, 3, 16, 8, 32
    x = jax.random.normal(kx, (B, C, HW, HW), jnp.float32)
    params = init_params(kp, patch=PATCH, width=HW, hidden=HIDDEN)
    w_emb_p, packed_p, hidden = prepare_params(params)

    fwd = jax.jit(functools.partial(skin_cancer_detector_forward,
                                    hidden=hidden, patch=PATCH,
                                    target_rows=2048))
    logits = jax.block_until_ready(fwd(x, w_emb_p, packed_p))

    assert logits.shape == (B, 1), logits.shape
    assert logits.dtype == jnp.float32

    ref = reference_forward(x, params, patch=PATCH)
    # MXU default-precision f32 matmuls can carry ~1e-2-level error vs the
    # XLA reference; 5e-2 is comfortably above that while far tighter than 1e-1.
    np.testing.assert_allclose(np.asarray(logits), np.asarray(ref),
                               atol=5e-2, rtol=5e-2)
    print("KERNEL_OK")
</pallas_src>

<mosaic_0001>
module attributes {stable_mosaic.version = 11 : i64} {
  func.func @_classifier_kernel(%arg0: i32, %arg1: memref<48x128xf32, #tpu.memory_space<vmem>>, %arg2: memref<128x128xf32, #tpu.memory_space<vmem>>, %arg3: memref<8x128xf32, #tpu.memory_space<vmem>>, %arg4: memref<8x128xf32, #tpu.memory_space<vmem>>) attributes {dimension_semantics = [#tpu.dimension_semantics<parallel>], iteration_bounds = array<i64: 2>, scalar_prefetch = 0 : i64, scratch_operands = 0 : i64, tpu.core_type = #tpu.core_type<tc>, window_params = [{transform_indices = @transform_0, window_bounds = array<i64: 48, 128>}, {pipeline_mode = #tpu.pipeline_mode<synchronous>, transform_indices = @transform_1, window_bounds = array<i64: 128, 128>}, {pipeline_mode = #tpu.pipeline_mode<synchronous>, transform_indices = @transform_2, window_bounds = array<i64: 8, 128>}, {transform_indices = @transform_3, window_bounds = array<i64: 8, 128>}]} {
    %c0 = arith.constant 0 : index
    %c0_0 = arith.constant 0 : index
    %0 = vector.load %arg1[%c0, %c0_0] : memref<48x128xf32, #tpu.memory_space<vmem>>, vector<48x128xf32>
    %c0_1 = arith.constant 0 : index
    %c0_2 = arith.constant 0 : index
    %1 = vector.load %arg2[%c0_1, %c0_2] : memref<128x128xf32, #tpu.memory_space<vmem>>, vector<128x128xf32>
    %cst = arith.constant dense<0.000000e+00> : vector<48x128xf32>
    %2 = tpu.matmul %0, %1, %cst {dimension_numbers = #tpu.dot_dimension_numbers<[1], [0], [0], [1], [0, 0, 1, 1], [], []>} : vector<48x128xf32>, vector<128x128xf32>, vector<48x128xf32> -> vector<48x128xf32>
    %c0_3 = arith.constant 0 : index
    %c0_4 = arith.constant 0 : index
    %3 = vector.load %arg3[%c0_3, %c0_4] : memref<8x128xf32, #tpu.memory_space<vmem>>, vector<1x128xf32>
    %4 = vector.broadcast %3 : vector<1x128xf32> to vector<48x128xf32>
    %5 = arith.addf %2, %4 : vector<48x128xf32>
    %6 = arith.mulf %5, %5 : vector<48x128xf32>
    %7 = arith.mulf %5, %6 : vector<48x128xf32>
    %cst_5 = arith.constant 4.471500e-02 : f32
    %8 = vector.broadcast %cst_5 : f32 to vector<48x128xf32>
    %9 = arith.mulf %8, %7 : vector<48x128xf32>
    %10 = arith.addf %5, %9 : vector<48x128xf32>
    %cst_6 = arith.constant 0.797884583 : f32
    %11 = vector.broadcast %cst_6 : f32 to vector<48x128xf32>
    %12 = arith.mulf %11, %10 : vector<48x128xf32>
    %13 = math.tanh %12 : vector<48x128xf32>
    %cst_7 = arith.constant 1.000000e+00 : f32
    %14 = vector.broadcast %cst_7 : f32 to vector<48x128xf32>
    %15 = arith.addf %14, %13 : vector<48x128xf32>
    %cst_8 = arith.constant 5.000000e-01 : f32
    %16 = vector.broadcast %cst_8 : f32 to vector<48x128xf32>
    %17 = arith.mulf %16, %15 : vector<48x128xf32>
    %18 = arith.mulf %5, %17 : vector<48x128xf32>
    %19 = tpu.iota {dimensions = array<i32: 1>} : vector<8x48xi32>
    %20 = tpu.iota {dimensions = array<i32: 0>} : vector<8x48xi32>
    %c6_i32 = arith.constant 6 : i32
    %21 = vector.broadcast %c6_i32 : i32 to vector<8x48xi32>
    %22 = arith.muli %20, %21 : vector<8x48xi32>
    %23 = arith.cmpi sge, %19, %22 : vector<8x48xi32>
    %c1_i32 = arith.constant 1 : i32
    %24 = vector.broadcast %c1_i32 : i32 to vector<8x48xi32>
    %25 = arith.addi %20, %24 : vector<8x48xi32>
    %c6_i32_9 = arith.constant 6 : i32
    %26 = vector.broadcast %c6_i32_9 : i32 to vector<8x48xi32>
    %27 = arith.muli %25, %26 : vector<8x48xi32>
    %28 = arith.cmpi slt, %19, %27 : vector<8x48xi32>
    %29 = arith.andi %23, %28 : vector<8x48xi1>
    %cst_10 = arith.constant 1.000000e+00 : f32
    %cst_11 = arith.constant 0.000000e+00 : f32
    %30 = vector.broadcast %cst_10 : f32 to vector<8x48xf32>
    %31 = vector.broadcast %cst_11 : f32 to vector<8x48xf32>
    %32 = arith.select %29, %30, %31 : vector<8x48xi1>, vector<8x48xf32>
    %cst_12 = arith.constant dense<0.000000e+00> : vector<8x128xf32>
    %33 = tpu.matmul %32, %18, %cst_12 {dimension_numbers = #tpu.dot_dimension_numbers<[1], [0], [0], [1], [0, 0, 1, 1], [], []>} : vector<8x48xf32>, vector<48x128xf32>, vector<8x128xf32> -> vector<8x128xf32>
    %cst_13 = arith.constant 0.166666672 : f32
    %34 = vector.broadcast %cst_13 : f32 to vector<8x128xf32>
    %35 = arith.mulf %33, %34 : vector<8x128xf32>
    %36 = tpu.iota {dimensions = array<i32: 1>} : vector<1x128xi32>
    %c32_i32 = arith.constant 32 : i32
    %37 = vector.broadcast %c32_i32 : i32 to vector<1x128xi32>
    %38 = arith.cmpi slt, %36, %37 : vector<1x128xi32>
    %cst_14 = arith.constant 1.000000e+00 : f32
    %cst_15 = arith.constant 0.000000e+00 : f32
    %39 = vector.broadcast %cst_14 : f32 to vector<1x128xf32>
    %40 = vector.broadcast %cst_15 : f32 to vector<1x128xf32>
    %41 = arith.select %38, %39, %40 : vector<1x128xi1>, vector<1x128xf32>
    %42 = vector.broadcast %41 : vector<1x128xf32> to vector<8x128xf32>
    %43 = arith.mulf %35, %42 : vector<8x128xf32>
    %cst_16 = arith.constant dense<0.000000e+00> : vector<8xf32>
    %44 = vector.multi_reduction <add>, %43, %cst_16 [1] : vector<8x128xf32> to vector<8xf32>
    %45 = vector.shape_cast %44 : vector<8xf32> to vector<8x1xf32>
    %cst_17 = arith.constant 3.125000e-02 : f32
    %46 = vector.broadcast %cst_17 : f32 to vector<8x1xf32>
    %47 = arith.mulf %45, %46 : vector<8x1xf32>
    %48 = vector.broadcast %47 : vector<8x1xf32> to vector<8x128xf32>
    %49 = arith.subf %35, %48 : vector<8x128xf32>
    %50 = vector.broadcast %41 : vector<1x128xf32> to vector<8x128xf32>
    %51 = arith.mulf %49, %50 : vector<8x128xf32>
    %52 = arith.mulf %51, %51 : vector<8x128xf32>
    %cst_18 = arith.constant dense<0.000000e+00> : vector<8xf32>
    %53 = vector.multi_reduction <add>, %52, %cst_18 [1] : vector<8x128xf32> to vector<8xf32>
    %54 = vector.shape_cast %53 : vector<8xf32> to vector<8x1xf32>
    %cst_19 = arith.constant 3.125000e-02 : f32
    %55 = vector.broadcast %cst_19 : f32 to vector<8x1xf32>
    %56 = arith.mulf %54, %55 : vector<8x1xf32>
    %57 = vector.broadcast %47 : vector<8x1xf32> to vector<8x128xf32>
    %58 = arith.subf %35, %57 : vector<8x128xf32>
    %cst_20 = arith.constant 9.99999974E-6 : f32
    %59 = vector.broadcast %cst_20 : f32 to vector<8x1xf32>
    %60 = arith.addf %56, %59 : vector<8x1xf32>
    %61 = math.rsqrt %60 : vector<8x1xf32>
    %62 = vector.broadcast %61 : vector<8x1xf32> to vector<8x128xf32>
    %63 = arith.mulf %58, %62 : vector<8x128xf32>
    %c1 = arith.constant 1 : index
    %c0_21 = arith.constant 0 : index
    %64 = vector.load %arg3[%c1, %c0_21] : memref<8x128xf32, #tpu.memory_space<vmem>>, vector<1x128xf32>
    %65 = vector.broadcast %64 : vector<1x128xf32> to vector<8x128xf32>
    %66 = arith.mulf %63, %65 : vector<8x128xf32>
    %c2 = arith.constant 2 : index
    %c0_22 = arith.constant 0 : index
    %67 = vector.load %arg3[%c2, %c0_22] : memref<8x128xf32, #tpu.memory_space<vmem>>, vector<1x128xf32>
    %68 = vector.broadcast %67 : vector<1x128xf32> to vector<8x128xf32>
    %69 = arith.addf %66, %68 : vector<8x128xf32>
    %c3 = arith.constant 3 : index
    %c0_23 = arith.constant 0 : index
    %70 = vector.load %arg3[%c3, %c0_23] : memref<8x128xf32, #tpu.memory_space<vmem>>, vector<1x128xf32>
    %71 = vector.broadcast %70 : vector<1x128xf32> to vector<8x128xf32>
    %72 = arith.mulf %69, %71 : vector<8x128xf32>
    %cst_24 = arith.constant dense<0.000000e+00> : vector<8xf32>
    %73 = vector.multi_reduction <add>, %72, %cst_24 [1] : vector<8x128xf32> to vector<8xf32>
    %74 = vector.shape_cast %73 : vector<8xf32> to vector<8x1xf32>
    %75 = vector.shape_cast %74 : vector<8x1xf32> to vector<8x1xf32>
    %76 = vector.broadcast %75 : vector<8x1xf32> to vector<8x128xf32>
    %c4 = arith.constant 4 : index
    %c0_25 = arith.constant 0 : index
    %77 = vector.load %arg3[%c4, %c0_25] : memref<8x128xf32, #tpu.memory_space<vmem>>, vector<1x128xf32>
    %78 = vector.broadcast %77 : vector<1x128xf32> to vector<8x128xf32>
    %79 = arith.addf %76, %78 : vector<8x128xf32>
    %c0_26 = arith.constant 0 : index
    %c0_27 = arith.constant 0 : index
    %80 = vector.load %arg4[%c0_26, %c0_27] : memref<8x128xf32, #tpu.memory_space<vmem>>, vector<8x128xf32>
    tpu.vector_store %arg4[%c0_26, %c0_27], %79 {strides = array<i32>} : memref<8x128xf32, #tpu.memory_space<vmem>>, vector<8x128xf32>,
    return
  }
  func.func @transform_0(%arg0: i32) -> (i32, i32) {
    %c0_i32 = arith.constant 0 : i32
    %c0_i32_0 = arith.constant 0 : i32
    return %arg0, %c0_i32 : i32, i32
  }
  func.func @transform_1(%arg0: i32) -> (i32, i32) {
    %c0_i32 = arith.constant 0 : i32
    %c0_i32_0 = arith.constant 0 : i32
    %c0_i32_1 = arith.constant 0 : i32
    return %c0_i32, %c0_i32_0 : i32, i32
  }
  func.func @transform_2(%arg0: i32) -> (i32, i32) {
    %c0_i32 = arith.constant 0 : i32
    %c0_i32_0 = arith.constant 0 : i32
    %c0_i32_1 = arith.constant 0 : i32
    return %c0_i32, %c0_i32_0 : i32, i32
  }
  func.func @transform_3(%arg0: i32) -> (i32, i32) {
    %c0_i32 = arith.constant 0 : i32
    %c0_i32_0 = arith.constant 0 : i32
    return %arg0, %c0_i32 : i32, i32
  }
}

</mosaic_0001>

<bundles_post_ra>
// kernel: skin_cancer_detector_forward.1
= control target key start
LH: loop header
LB: loop body
LE: loop exit
PB: predicated region body
PF: predicated region fallthrough
CT: control target
= control target key end

     0   :  { %s725_s12 = smov 0   ;;  %s845_s0 = inlined_call_operand.vmem [shape: f32[96,128], index: 0, kind: input, shape index: {}]   ;;  %s846_s1 = inlined_call_operand.vmem [shape: f32[128,128], index: 1, kind: input, shape index: {}]   ;;  %s847_s2 = inlined_call_operand.vmem [shape: f32[8,128], index: 2, kind: input, shape index: {}]   ;;  %s848_s3 = inlined_call_operand.vmem [shape: f32[16,128], index: 3, kind: output, shape index: {}]  }
   0x1 LB: > { %s731_s13 = sadd.s32 4294967295, %s700_s12   ;;  %p532_p0 = scmp.ge.s32.totalorder %s700_s12, 1  ;;  %s700_s12 = sphi %s725_s12, %s13_s12  }
   0x2   : > { %p138_p1 = scmp.lt.s32.totalorder %s700_s12, 3 }
   0x4   : > { %p139_p2 = pnand %p532_p0, %p138_p1 }
   0x5   : > { %v177_v0 = vld [vmem:[%s846_s1] sm:$0xff] (!%p139_p2)  ;;  %v178_v1 = vld [vmem:[%s846_s1 + $0x8] sm:$0xff] (!%p139_p2)  ;;  %v179_v2 = vld [vmem:[%s846_s1 + $0x10] sm:$0xff] (!%p139_p2)  ;;  %s161_s20 = smul.u32 (!%p139_p2), 6, %s731_s13  ;;  %v702_v30 = vmov (!%p139_p2), 0.0|0.0   ;;  %vm703_vm0 = vmmov (!%p139_p2), 0  }
   0x6   : > { %142 = sbr.rel (%p139_p2) target bundleno = 971 (0x3cb), region = 32  ;;  %v628_v3 = vpack.c.bf16 (!%p139_p2), %v178_v1, %v177_v0  ;;  %v180_v4 = vld [vmem:[%s846_s1 + $0x18] sm:$0xff] (!%p139_p2)  ;;  %v181_v6 = vld [vmem:[%s846_s1 + $0x20] sm:$0xff] (!%p139_p2)  ;;  %v182_v7 = vld [vmem:[%s846_s1 + $0x28] sm:$0xff] (!%p139_p2)  ;;  %660 = vmatprep.subr.bf16.mxu1 (!%p139_p2), %v702_v30  ;;  %v704_v31 = vmov (!%p139_p2), 0.0   ;;  %vm358_vm4 = vcmask (!%p139_p2), 392192  }
   0x7   : > { %v632_v5 = vpack.c.bf16 (!%p139_p2), %v180_v4, %v179_v2  ;;  %p162_p3 = scmp.lt.s32.totalorder (!%p139_p2), %s161_s20, 11  ;;  %v636_v8 = vpack.c.bf16 (!%p139_p2), %v182_v7, %v181_v6  ;;  %v183_v9 = vld [vmem:[%s846_s1 + $0x30] sm:$0xff] (!%p139_p2)  ;;  %v184_v10 = vld [vmem:[%s846_s1 + $0x38] sm:$0xff] (!%p139_p2)  ;;  %v185_v13 = vld [vmem:[%s846_s1 + $0x40] sm:$0xff] (!%p139_p2)  ;;  %625 = vmatprep.mubr.msk.f32.mxu1 (!%p139_p2), %vm703_vm0, %v704_v31  ;;  %p167_p4 = scmp.lt.s32.totalorder (!%p139_p2), %s731_s13, 1 }
   0x8   : > { %629 = vmatprep.subr.bf16.mxu0 (!%p139_p2), %v628_v3  ;;  %v640_v12 = vpack.c.bf16 (!%p139_p2), %v184_v10, %v183_v9  ;;  %v186_v14 = vld [vmem:[%s846_s1 + $0x48] sm:$0xff] (!%p139_p2)  ;;  %v187_v16 = vld [vmem:[%s846_s1 + $0x50] sm:$0xff] (!%p139_p2)  ;;  %v188_v17 = vld [vmem:[%s846_s1 + $0x58] sm:$0xff] (!%p139_p2)  ;;  %v347_v10 = vlaneseq (!%p139_p2) }
   0x9   : > { %631 = vmatpush3.bf16.msra.mxu0 (!%p139_p2), %v628_v3  ;;  %v644_v15 = vpack.c.bf16 (!%p139_p2), %v186_v14, %v185_v13  ;;  %v648_v18 = vpack.c.bf16 (!%p139_p2), %v188_v17, %v187_v16  ;;  %v189_v19 = vld [vmem:[%s846_s1 + $0x60] sm:$0xff] (!%p139_p2)  ;;  %v190_v20 = vld [vmem:[%s846_s1 + $0x68] sm:$0xff] (!%p139_p2)  ;;  %v191_v22 = vld [vmem:[%s846_s1 + $0x70] sm:$0xff] (!%p139_p2) }
   0xa   : > { %633 = vmatprep.subr.bf16.mxu0 (!%p139_p2), %v632_v5  ;;  %v652_v21 = vpack.c.bf16 (!%p139_p2), %v190_v20, %v189_v19  ;;  %v192_v23 = vld [vmem:[%s846_s1 + $0x78] sm:$0xff] (!%p139_p2)  ;;  %v535_v32 = vld [vmem:[%s847_s2] ss:$0 sm:$0xff] (!%p139_p2)  ;;  %v350_v13 = vshrl.u32 (!%p139_p2), %v347_v10, 7 }
   0xb   : > { %v656_v24 = vpack.c.bf16 (!%p139_p2), %v192_v23, %v191_v22 }
   0xc   : > { %v353_v20 = vadd.s32 (!%p139_p2), 1, %v350_v13 }
   0xd   : > { %s850_s20 = smov (!%p162_p3, %s161_s20), 11  ;;  %635 = vmatpush3.bf16.msra.mxu0 %v632_v5  ;;  %s852_s13 = smov (!%p167_p4, %s731_s13), 1 }
   0xe   : > { %s533_s4 = sshll.u32 %s850_s20, 3  ;;  %637 = vmatprep.subr.bf16.mxu0 %v636_v8 }
   0xf   : > { %s763_s7 = scalar_lea.vmem %s845_s0, %s533_s4 }
  0x10   : > { %v171_v11 = vld [vmem:[%s763_s7] sm:$0xff]  ;;  %v172_v25 = vld [vmem:[%s763_s7 + $0x8] sm:$0xff]  ;;  %v173_v26 = vld [vmem:[%s763_s7 + $0x10] sm:$0xff] }
  0x11   : > { %604 = vmatprep.mubr.f32.mxu0 %v171_v11  ;;  %639 = vmatpush3.bf16.msra.mxu0 %v636_v8  ;;  %v174_v27 = vld [vmem:[%s763_s7 + $0x18] sm:$0xff]  ;;  %v175_v28 = vld [vmem:[%s763_s7 + $0x20] sm:$0xff]  ;;  %v176_v29 = vld [vmem:[%s763_s7 + $0x28] sm:$0xff]  ;;  %s534_s7 = sshll.u32 %s852_s13, 3 }
  0x12   : > { %641 = vmatprep.subr.bf16.mxu0 %v640_v12  ;;  %s170_s14 = scalar_lea.vmem %s848_s3, %s534_s7 }
  0x15   : > { %643 = vmatpush3.bf16.msra.mxu0 %v640_v12 }
  0x16   : > { %645 = vmatprep.subr.bf16.mxu0 %v644_v15 }
  0x19   : > { %647 = vmatpush3.bf16.msra.mxu0 %v644_v15 }
  0x1a   : > { %649 = vmatprep.subr.bf16.mxu0 %v648_v18 }
  0x1d   : > { %651 = vmatpush3.bf16.msra.mxu0 %v648_v18 }
  0x1e   : > { %653 = vmatprep.subr.bf16.mxu0 %v652_v21 }
  0x21   : > { %655 = vmatpush3.bf16.msra.mxu0 %v652_v21 }
  0x22   : > { %657 = vmatprep.subr.bf16.mxu0 %v656_v24 }
  0x25   : > { %659 = vmatpush3.bf16.msra.mxu0 %v656_v24 }
  0x28   : > { %605 = vmatmul.mubr.f32.vlgmr.msra.gmra.mrb[0].mxu0 %v172_v25 }
  0x29   : > { %607 = vmatprep.mubr.f32.mxu0 %v173_v26 }
  0x2c   : > { %608 = vmatmul.mubr.f32.gmra.mrb[2].mxu0 %v174_v27  ;;  %v348_v27 = vand.u32 127, %v347_v10 }
  0x2d   : > { %610 = vmatprep.mubr.f32.mxu0 %v175_v28 }
  0x2e   : > { %vm433_vm5 = vcmp.lt.s32.totalorder %v348_v27, 32 }
  0x30   : > { %611 = vmatmul.mubr.f32.gmra.mrb[4].mxu0 %v176_v29 }
  0xfb   : > { %v606_v33 = vpop.f32.mrb[0].mxu0 }
  0xfc   : > { %v270_v34 = vadd.f32 %v606_v33, %v535_v32  ;;  %v264_v35 = vpop.f32.mrb[1].mxu0  ;;  %v351_v33 = vmul.u32 6, %v350_v13 }
  0xfd   : > { %v265_v36 = vadd.f32 %v535_v32, %v264_v35  ;;  %v354_v35 = vmul.u32 6, %v353_v20 }
  0xfe   : > { %v294_v37 = vmul.f32 %v270_v34, %v270_v34  ;;  %vm352_vm1 = vcmp.ge.s32.totalorder %v348_v27, %v351_v33 }
  0xff   : > { %v293_v38 = vmul.f32 %v265_v36, %v265_v36  ;;  %v609_v39 = vpop.f32.mrb[2].mxu0  ;;  %vm355_vm2 = vcmp.lt.s32.totalorder %v348_v27, %v354_v35 }
 0x100   : > { %v300_v40 = vmul.f32 %v294_v37, %v270_v34  ;;  %v800_v41 = vadd.f32 %v609_v39, %v535_v32  ;;  %v274_v42 = vpop.f32.mrb[3].mxu0  ;;  %vm356_vm3 = vmand %vm352_vm1, %vm355_vm2 }
 0x101   : > { %v299_v43 = vmul.f32 %v293_v38, %v265_v36  ;;  %v802_v44 = vadd.f32 %v535_v32, %v274_v42 }
 0x102   : > { %v306_v45 = vmul.f32 0.044715, %v300_v40  ;;  %v296_v46 = vmul.f32 %v800_v41, %v800_v41 }
 0x103   : > { %v305_v47 = vmul.f32 0.044715, %v299_v43  ;;  %v295_v48 = vmul.f32 %v802_v44, %v802_v44  ;;  %v612_v49 = vpop.f32.mrb[4].mxu0 }
 0x104   : > { %v312_v50 = vadd.f32 %v306_v45, %v270_v34  ;;  %v302_v51 = vmul.f32 %v296_v46, %v800_v41  ;;  %v809_v52 = vadd.f32 %v612_v49, %v535_v32  ;;  %v284_v53 = vpop.f32.mrb[5].mxu0 }
 0x105   : > { %v311_v54 = vadd.f32 %v305_v47, %v265_v36  ;;  %v301_v55 = vmul.f32 %v295_v48, %v802_v44  ;;  %v285_v56 = vadd.f32 %v535_v32, %v284_v53  ;;  %v357_v47 = vsel %vm356_vm3, 1.0, %v704_v31 }
 0x106   : > { %v318_v57 = vmul.f32 0.7978846, %v312_v50  ;;  %v308_v58 = vmul.f32 0.044715, %v302_v51  ;;  %v298_v59 = vmul.f32 %v809_v52, %v809_v52  ;;  %v434_v48 = vsel %vm433_vm5, 1.0, %v704_v31 }
 0x107   : > { %v317_v60 = vmul.f32 0.7978846, %v311_v54  ;;  %v307_v61 = vmul.f32 0.044715, %v301_v55  ;;  %v297_v62 = vmul.f32 %v285_v56, %v285_v56  ;;  %v537_v31 = vld [vmem:[%s847_s2 + $0x1] ss:$0 sm:$0xff] }
 0x108   : > { %v314_v63 = vadd.f32 %v308_v58, %v800_v41  ;;  %v304_v0 = vmul.f32 %v298_v59, %v809_v52  ;;  %680 = vtanh.f32 %v318_v57 }
 0x109   : > { %v313_v1 = vadd.f32 %v307_v61, %v802_v44  ;;  %v303_v2 = vmul.f32 %v297_v62, %v285_v56  ;;  %682 = vtanh.f32 %v317_v60  ;;  %v538_v61 = vld [vmem:[%s847_s2 + $0x2] ss:$0 sm:$0xff] }
 0x10a   : > { %v320_v3 = vmul.f32 0.7978846, %v314_v63  ;;  %v310_v4 = vmul.f32 0.044715, %v304_v0  ;;  %v539_v63 = vld [vmem:[%s847_s2 + $0x3] ss:$0 sm:$0xff] }
 0x10b   : > { %v319_v5 = vmul.f32 0.7978846, %v313_v1  ;;  %v309_v6 = vmul.f32 0.044715, %v303_v2  ;;  %v540_v2 = vld [vmem:[%s847_s2 + $0x4] ss:$0 sm:$0xff] }
 0x10c   : > { %684 = vtanh.f32 %v320_v3  ;;  %v316_v7 = vadd.f32 %v310_v4, %v809_v52 }
 0x10d   : > { %686 = vtanh.f32 %v319_v5  ;;  %v315_v8 = vadd.f32 %v309_v6, %v285_v56 }
 0x10e   : > { %v322_v9 = vmul.f32 0.7978846, %v316_v7 }
 0x10f   : > { %v321_v11 = vmul.f32 0.7978846, %v315_v8 }
 0x110   : > { %688 = vtanh.f32 %v322_v9 }
 0x111   : > { %690 = vtanh.f32 %v321_v11 }
 0x112   : > { %v681_v12 = vpop.eup %680 }
 0x113   : > { %v683_v14 = vpop.eup %682  ;;  %v330_v15 = vadd.f32 1.0, %v681_v12 }
 0x114   : > { %v329_v16 = vadd.f32 1.0, %v683_v14 }
 0x115   : > { %v336_v17 = vmul.f32 0.5, %v330_v15 }
 0x116   : > { %v685_v18 = vpop.eup %684  ;;  %v335_v19 = vmul.f32 0.5, %v329_v16 }
 0x117   : > { %v687_v21 = vpop.eup %686  ;;  %v342_v22 = vmul.f32 %v336_v17, %v270_v34  ;;  %v332_v23 = vadd.f32 1.0, %v685_v18 }
 0x118   : > { %v341_v24 = vmul.f32 %v335_v19, %v265_v36  ;;  %v331_v25 = vadd.f32 1.0, %v687_v21 }
 0x119   : > { %v338_v26 = vmul.f32 0.5, %v332_v23 }
 0x11a   : > { %v689_v28 = vpop.eup %688  ;;  %v661_v29 = vpack.c.bf16 %v342_v22, %v341_v24  ;;  %v337_v32 = vmul.f32 0.5, %v331_v25 }
 0x11b   : > { %v691_v37 = vpop.eup %690  ;;  %v344_v38 = vmul.f32 %v338_v26, %v800_v41  ;;  %v334_v39 = vadd.f32 1.0, %v689_v28 }
 0x11c   : > { %662 = vmatpush3.bf16.msra.mxu1 %v661_v29  ;;  %v343_v40 = vmul.f32 %v337_v32, %v802_v44  ;;  %v333_v42 = vadd.f32 1.0, %v691_v37 }
 0x11d   : > { %663 = vmatprep.subr.bf16.mxu1 %v702_v30  ;;  %v340_v34 = vmul.f32 0.5, %v334_v39 }
 0x11e   : > { %v664_v36 = vpack.c.bf16 %v344_v38, %v343_v40  ;;  %v339_v43 = vmul.f32 0.5, %v333_v42 }
 0x11f   : > { %v346_v45 = vmul.f32 %v340_v34, %v809_v52 }
 0x120   : > { %665 = vmatpush3.bf16.msra.mxu1 %v664_v36  ;;  %v345_v46 = vmul.f32 %v339_v43, %v285_v56 }
 0x121   : > { %666 = vmatprep.subr.bf16.mxu1 %v702_v30 }
 0x122   : > { %v667_v41 = vpack.c.bf16 %v346_v45, %v345_v46 }
 0x124   : > { %668 = vmatpush3.bf16.msra.mxu1 %v667_v41 }
 0x127   : > { %626 = vmatmul.mubr.msk.f32.vlgmr.msra.gmra.mrb[0].mxu1 %vm358_vm4, %v357_v47 }
 0x1fa   : > { %v428_v44 = vpop.f32.mrb[0].mxu1 }
 0x1fb   : > { %v432_v49 = vmul.f32 0.16666667, %v428_v44  ;;  %v627_v50 = vpop.f32.mrb[1].mxu1 }
 0x1fd   : > { %v435_v51 = vmul.f32 %v434_v48, %v432_v49 }
 0x1ff   : > { %436 = vadd.xlane.f32.xlu0 %v435_v51 }
 0x28c   : > { %v437_v52 = vpop.xlane.xlu0 %436 }
 0x28d   : > { %v438_v53 = vmul.f32 0.03125, %v437_v52 }
 0x28f   : > { %v439_v54 = vsub.f32 %v432_v49, %v438_v53 }
 0x291   : > { %v440_v55 = vmul.f32 %v439_v54, %v434_v48 }
 0x293   : > { %v441_v30 = vmul.f32 %v440_v55, %v440_v55 }
 0x295   : > { %442 = vadd.xlane.f32.xlu0 %v441_v30 }
 0x322   : > { %v443_v56 = vpop.xlane.xlu0 %442 }
 0x323   : > { %v444_v57 = vmul.f32 0.03125, %v443_v56 }
 0x325   : > { %v445_v58 = vadd.f32 1e-05, %v444_v57 }
 0x327   : > { %692 = vrsqrt.f32 %v445_v58 }
 0x331   : > { %v693_v59 = vpop.eup %692 }
 0x332   : > { %v447_v60 = vmul.f32 %v693_v59, %v439_v54 }
 0x334   : > { %v453_v62 = vmul.f32 %v537_v31, %v447_v60 }
 0x336   : > { %v459_v0 = vadd.f32 %v538_v61, %v453_v62 }
 0x338   : > { %v465_v1 = vmul.f32 %v539_v63, %v459_v0 }
 0x33a   : > { %466 = vadd.xlane.f32.xlu1 %v465_v1 }
 0x3c7   : > { %v467_v3 = vpop.xlane.xlu1 %466 }
 0x3c8   : > { %v473_v4 = vadd.f32 %v540_v2, %v467_v3 }
 0x3ca   : > { %474 = vst [vmem:[%s170_s14] sm:$0xff] %v473_v4 }
 0x3cb PF: > { %s13_s12 = sadd.s32 1, %s700_s12  }
 0x3cc   : > { %p10_p5 = scmp.ge.s32.totalorder %s13_s12, 4  }
 0x3ce   :  { %12 = sbr.rel (!%p10_p5) target bundleno = 1 (0x1), region = 62 }

</bundles_post_ra>
